<compile_context>
chip_gen: v5e
topology: v5e:2x2
jax: 0.10.0
libtpu: 0.0.40
codegen_flags: <defaults>
</compile_context>

<pallas_src>
import functools
import math

import jax
import jax.numpy as jnp
from jax.experimental import pallas as pl
from jax.experimental.pallas import tpu as pltpu

_EPS = 1e-12                     # matches torch.nn.functional.normalize default
_SPLIT_MIN_BYTES = 256 << 10     # only split a 1-block grid when the block is this big
_VMEM_SLACK = 8 << 20


def _round_up(a: int, m: int) -> int:
    return -(-a // m) * m


def _round_down(a: int, m: int) -> int:
    return (a // m) * m


def _sublane_multiple(dtype) -> int:
    # 8 rows per sublane tile for 32-bit dtypes, 16 for 16-bit, 32 for 8-bit.
    itemsize = jnp.dtype(dtype).itemsize
    return 8 * max(1, 4 // itemsize)


@functools.lru_cache(maxsize=1)
def _base_block_cap() -> int:
    try:
        kind = jax.devices()[0].device_kind.lower()
    except Exception:
        return 4 << 20
    if "v5" in kind or "v6" in kind:
        return 8 << 20           # 128 MiB-VMEM parts: bigger tiles amortize step overhead
    return 4 << 20               # v7x (64 MiB VMEM) and unknown parts: conservative


def _block_byte_cap(dtype) -> int:
    itemsize = jnp.dtype(dtype).itemsize
    cap = _base_block_cap()
    if itemsize < 4:
        # Account for the in-kernel f32 upcast of sub-32-bit inputs.
        cap = cap * itemsize // 4
    return max(cap, 64 << 10)


def _vmem_limit(*block_bytes: int) -> int:
    # 2x double-buffer per block, ~3 f32-sized intermediates of the biggest
    # block, plus Mosaic slack.  Floored at the default scoped limit.
    total = 2 * sum(block_bytes) + 3 * max(block_bytes) + _VMEM_SLACK
    return int(min(max(total, 32 << 20), 100 << 20))


# ----------------------------------------------------------------------------
# Kernels
# ----------------------------------------------------------------------------

def _l2_last_kernel(x_ref, o_ref):
    # Block (tr, d); reduce over lanes (last axis).
    x = x_ref[...].astype(jnp.float32)
    sq = jnp.sum(x * x, axis=-1, keepdims=True)                  # (tr, 1)
    # rsqrt(max(sq, eps^2)) == 1 / max(||x||, eps)  (sqrt is monotone)
    inv = jax.lax.rsqrt(jnp.maximum(sq, _EPS * _EPS))
    o_ref[...] = (x * inv).astype(o_ref.dtype)


def _l2_mid_flat_kernel(x_ref, o_ref, *, c, s):
    # Block (tp, c*s); channel k lives in lanes [k*s, (k+1)*s) (s % 128 == 0),
    # so the channel reduction is c-1 VPU adds over lane-aligned chunks.
    x = x_ref[...].astype(jnp.float32)
    sq = None
    for k in range(c):
        chunk = x[:, k * s:(k + 1) * s]
        sq = chunk * chunk if sq is None else sq + chunk * chunk  # (tp, s)
    inv = jax.lax.rsqrt(jnp.maximum(sq, _EPS * _EPS))
    for k in range(c):
        o_ref[:, k * s:(k + 1) * s] = (x[:, k * s:(k + 1) * s] * inv).astype(o_ref.dtype)


def _l2_mid_kernel(x_ref, o_ref):
    # Block (tp, C, ts); reduce over the second-to-last (sublane) axis,
    # keeping the large trailing axis on lanes.
    x = x_ref[...].astype(jnp.float32)
    sq = jnp.sum(x * x, axis=-2, keepdims=True)                  # (tp, 1, ts)
    inv = jax.lax.rsqrt(jnp.maximum(sq, _EPS * _EPS))
    o_ref[...] = (x * inv).astype(o_ref.dtype)


def _rownorm_reduce_kernel(x_ref, inv_ref, *, d, td):
    # Two-pass path, pass 1: accumulate sum of squares over tiled d, emit
    # per-row inverse norms on the last d-block.  Output block is resident
    # across the (arbitrary) d axis.
    j = pl.program_id(1)

    @pl.when(j == 0)
    def _():
        inv_ref[...] = jnp.zeros_like(inv_ref)

    x = x_ref[...].astype(jnp.float32)                           # (tr, td)
    col = j * td + jax.lax.broadcasted_iota(jnp.int32, x.shape, 1)
    x = jnp.where(col < d, x, 0.0)                               # mask OOB lanes
    inv_ref[...] += jnp.sum(x * x, axis=-1, keepdims=True)

    @pl.when(j == pl.num_programs(1) - 1)
    def _():
        inv_ref[...] = jax.lax.rsqrt(jnp.maximum(inv_ref[...], _EPS * _EPS))


def _row_scale_kernel(x_ref, inv_ref, o_ref):
    # Two-pass path, pass 2: scale each d-tile by the per-row inverse norm.
    o_ref[...] = (x_ref[...].astype(jnp.float32) * inv_ref[...]).astype(o_ref.dtype)


# ----------------------------------------------------------------------------
# Wrappers
# ----------------------------------------------------------------------------

def _normalize_last_axis(x2d: jax.Array, cap: int | None = None) -> jax.Array:
    rows, d = x2d.shape
    dtype = x2d.dtype
    itemsize = jnp.dtype(dtype).itemsize
    sub = _sublane_multiple(dtype)
    if cap is None:
        cap = _block_byte_cap(dtype)

    row_bytes = d * itemsize

    if row_bytes * sub <= cap:
        # Single-pass: whole reduction dim in one block, rows tiled by bytes.
        if rows <= sub:
            tr = rows                                            # full dim -> legal block
        else:
            tr = _round_down(max(cap // row_bytes, sub), sub)
            tr = min(tr, _round_up(rows, sub))
            if pl.cdiv(rows, tr) == 1 and rows * row_bytes >= _SPLIT_MIN_BYTES:
                # v7x megacore: avoid a degenerate single-iteration grid.
                tr = max(sub, _round_up(pl.cdiv(rows, 2), sub))
        blk = tr * d * itemsize
        return pl.pallas_call(
            _l2_last_kernel,
            out_shape=jax.ShapeDtypeStruct((rows, d), dtype),
            grid_spec=pltpu.PrefetchScalarGridSpec(
                num_scalar_prefetch=0,
                grid=(pl.cdiv(rows, tr),),
                in_specs=[pl.BlockSpec((tr, d), lambda i: (i, 0))],
                out_specs=pl.BlockSpec((tr, d), lambda i: (i, 0)),
            ),
            compiler_params=pltpu.CompilerParams(
                dimension_semantics=("parallel",),
                vmem_limit_bytes=_vmem_limit(blk, blk),
            ),
        )(x2d)

    # Very long reduction dim: tile d.  Pass 1 reduces to per-row inverse
    # norms (f32); pass 2 rescales.  Costs one extra read of x but stays
    # within VMEM for arbitrary d.
    tr = rows if rows <= sub else sub
    td = max(128, _round_down(cap // max(tr * itemsize, 1), 128))
    td = min(td, _round_up(d, 128))
    nd = pl.cdiv(d, td)
    x_blk = tr * td * itemsize
    inv_blk = tr * 4

    inv = pl.pallas_call(
        functools.partial(_rownorm_reduce_kernel, d=d, td=td),
        out_shape=jax.ShapeDtypeStruct((rows, 1), jnp.float32),
        grid_spec=pltpu.PrefetchScalarGridSpec(
            num_scalar_prefetch=0,
            grid=(pl.cdiv(rows, tr), nd),
            in_specs=[pl.BlockSpec((tr, td), lambda i, j: (i, j))],
            out_specs=pl.BlockSpec((tr, 1), lambda i, j: (i, 0)),
        ),
        compiler_params=pltpu.CompilerParams(
            dimension_semantics=("parallel", "arbitrary"),
            vmem_limit_bytes=_vmem_limit(x_blk, inv_blk),
        ),
    )(x2d)

    return pl.pallas_call(
        _row_scale_kernel,
        out_shape=jax.ShapeDtypeStruct((rows, d), dtype),
        grid_spec=pltpu.PrefetchScalarGridSpec(
            num_scalar_prefetch=0,
            grid=(pl.cdiv(rows, tr), nd),
            in_specs=[pl.BlockSpec((tr, td), lambda i, j: (i, j)),
                      pl.BlockSpec((tr, 1), lambda i, j: (i, 0))],
            out_specs=pl.BlockSpec((tr, td), lambda i, j: (i, j)),
        ),
        compiler_params=pltpu.CompilerParams(
            dimension_semantics=("parallel", "parallel"),
            vmem_limit_bytes=_vmem_limit(x_blk, inv_blk, x_blk),
        ),
    )(x2d, inv)


def _normalize_mid_axis(x3d: jax.Array, cap: int | None = None) -> jax.Array:
    p, c, s = x3d.shape
    dtype = x3d.dtype
    itemsize = jnp.dtype(dtype).itemsize
    sub = _sublane_multiple(dtype)
    if cap is None:
        cap = _block_byte_cap(dtype)

    row_bytes = c * s * itemsize

    if s % 128 == 0 and c <= 32 and row_bytes * sub <= cap:
        # Flattened 2-D path: full sublane occupancy, lane-dense stores.
        x2d = x3d.reshape(p, c * s)
        if p <= sub:
            tp = p
        else:
            tp = _round_down(max(cap // row_bytes, sub), sub)
            tp = min(tp, _round_up(p, sub))
            if pl.cdiv(p, tp) == 1 and p * row_bytes >= _SPLIT_MIN_BYTES:
                tp = max(sub, _round_up(pl.cdiv(p, 2), sub))
        blk = tp * c * s * itemsize
        out = pl.pallas_call(
            functools.partial(_l2_mid_flat_kernel, c=c, s=s),
            out_shape=jax.ShapeDtypeStruct((p, c * s), dtype),
            grid_spec=pltpu.PrefetchScalarGridSpec(
                num_scalar_prefetch=0,
                grid=(pl.cdiv(p, tp),),
                in_specs=[pl.BlockSpec((tp, c * s), lambda i: (i, 0))],
                out_specs=pl.BlockSpec((tp, c * s), lambda i: (i, 0)),
            ),
            compiler_params=pltpu.CompilerParams(
                dimension_semantics=("parallel",),
                vmem_limit_bytes=_vmem_limit(blk, blk),
            ),
        )(x2d)
        return out.reshape(p, c, s)

    # General 3-D path: suffix stays on lanes, channel reduction on sublanes.
    # TODO(synk): an extremely large C (c*128*itemsize > cap) would need a
    # tiled reduction over C with an accumulator; not implemented.
    if row_bytes > cap and s >= 256:
        ts = max(128, _round_down(cap // (c * itemsize), 128))
        ts = min(ts, _round_down(s, 128))        # block <= extent, partial last block
    else:
        ts = s                                   # full extent is always a legal block dim

    tp = max(1, cap // max(c * ts * itemsize, 1))
    tp = min(tp, p)
    if (pl.cdiv(p, tp) * pl.cdiv(s, ts) == 1 and p > 1
            and p * row_bytes >= _SPLIT_MIN_BYTES):
        tp = pl.cdiv(p, 2)                       # keep both v7x TensorCores busy

    blk = tp * c * ts * itemsize
    return pl.pallas_call(
        _l2_mid_kernel,
        out_shape=jax.ShapeDtypeStruct((p, c, s), dtype),
        grid_spec=pltpu.PrefetchScalarGridSpec(
            num_scalar_prefetch=0,
            grid=(pl.cdiv(p, tp), pl.cdiv(s, ts)),
            in_specs=[pl.BlockSpec((tp, c, ts), lambda i, j: (i, 0, j))],
            out_specs=pl.BlockSpec((tp, c, ts), lambda i, j: (i, 0, j)),
        ),
        compiler_params=pltpu.CompilerParams(
            dimension_semantics=("parallel", "parallel"),
            vmem_limit_bytes=_vmem_limit(blk, blk),
        ),
    )(x3d)


def normalize(x: jax.Array, dim: int) -> jax.Array:
    """Pallas TPU equivalent of torch.nn.functional.normalize(x, dim=dim, p=2)."""
    ndim = x.ndim
    dim = dim % ndim
    shape = x.shape
    if x.size == 0:
        return x
    c = shape[dim]
    prefix = int(math.prod(shape[:dim]))
    suffix = int(math.prod(shape[dim + 1:]))

    if suffix == 1:
        # Reduction axis is (effectively) the last axis.
        out = _normalize_last_axis(x.reshape(prefix, c))
    else:
        # Contiguous reshape only (no moveaxis/transpose).
        out = _normalize_mid_axis(x.reshape(prefix, c, suffix))
    return out.reshape(shape)


def _reference_normalize(x: jax.Array, dim: int) -> jax.Array:
    norm = jnp.sqrt(jnp.sum(jnp.square(x.astype(jnp.float32)), axis=dim, keepdims=True))
    return (x.astype(jnp.float32) / jnp.maximum(norm, _EPS)).astype(x.dtype)


if __name__ == "__main__":
    key = jax.random.PRNGKey(0)
    k0, k1, k2, k3, k4, k5, k6 = jax.random.split(key, 7)

    # 1) NCHW feature map, normalize over channels (dim=1): flattened mid-axis path.
    x = jax.random.normal(k0, (2, 4, 16, 16), dtype=jnp.float32)
    out = jax.block_until_ready(normalize(x, dim=1))
    ref = _reference_normalize(x, dim=1)
    assert out.shape == x.shape and out.dtype == x.dtype
    assert jnp.max(jnp.abs(out - ref)) < 1e-5

    # 2) Token embeddings, normalize over the last dim: last-axis path.
    tokens = jax.random.normal(k1, (2, 8, 32), dtype=jnp.float32)
    out2 = jax.block_until_ready(normalize(tokens, dim=-1))
    assert jnp.max(jnp.abs(out2 - _reference_normalize(tokens, dim=-1))) < 1e-5

    # 3) Row count not a sublane multiple (no pad/slice HBM passes).
    odd_rows = jax.random.normal(k2, (5, 40), dtype=jnp.float32)
    out3 = jax.block_until_ready(normalize(odd_rows, dim=1))
    assert jnp.max(jnp.abs(out3 - _reference_normalize(odd_rows, dim=1))) < 1e-5

    # 4) Odd mid-axis shape (suffix not a multiple of 128): 3-D sublane-reduce path.
    odd_mid = jax.random.normal(k3, (3, 5, 6), dtype=jnp.float32)
    out4 = jax.block_until_ready(normalize(odd_mid, dim=1))
    assert jnp.max(jnp.abs(out4 - _reference_normalize(odd_mid, dim=1))) < 1e-5

    # 5) bf16 input (f32 accumulation inside the kernel).
    xb = jax.random.normal(k4, (2, 8, 32), dtype=jnp.bfloat16)
    out5 = jax.block_until_ready(normalize(xb, dim=-1))
    ref5 = _reference_normalize(xb, dim=-1)
    assert out5.dtype == jnp.bfloat16
    assert jnp.max(jnp.abs(out5.astype(jnp.float32) - ref5.astype(jnp.float32))) < 2e-2

    # 6) Exercise the two-pass long-reduction-dim path (tiny byte cap override).
    long_d = jax.random.normal(k5, (4, 1000), dtype=jnp.float32)
    out6 = jax.block_until_ready(_normalize_last_axis(long_d, cap=8 * 1024))
    assert jnp.max(jnp.abs(out6 - _reference_normalize(long_d, dim=1))) < 1e-5

    # 7) Exercise suffix tiling with a partial lane block in the 3-D mid path.
    wide_s = jax.random.normal(k6, (2, 5, 390), dtype=jnp.float32)
    out7 = jax.block_until_ready(_normalize_mid_axis(wide_s, cap=4096))
    assert jnp.max(jnp.abs(out7 - _reference_normalize(wide_s, dim=1))) < 1e-5

    print("KERNEL_OK")
</pallas_src>

<mosaic_0001>
module attributes {stable_mosaic.version = 11 : i64} {
  func.func @_l2_mid_flat_kernel(%arg0: i32, %arg1: memref<2x1024xf32, #tpu.memory_space<vmem>>, %arg2: memref<2x1024xf32, #tpu.memory_space<vmem>>) attributes {dimension_semantics = [#tpu.dimension_semantics<parallel>], iteration_bounds = array<i64: 1>, scalar_prefetch = 0 : i64, scratch_operands = 0 : i64, tpu.core_type = #tpu.core_type<tc>, window_params = [{transform_indices = @transform_0, window_bounds = array<i64: 2, 1024>}, {transform_indices = @transform_1, window_bounds = array<i64: 2, 1024>}]} {
    %c0 = arith.constant 0 : index
    %c0_0 = arith.constant 0 : index
    %0 = vector.load %arg1[%c0, %c0_0] : memref<2x1024xf32, #tpu.memory_space<vmem>>, vector<2x1024xf32>
    %1 = vector.extract_strided_slice %0 {offsets = [0, 0], sizes = [2, 256], strides = [1, 1]} : vector<2x1024xf32> to vector<2x256xf32>
    %2 = arith.mulf %1, %1 : vector<2x256xf32>
    %3 = vector.extract_strided_slice %0 {offsets = [0, 256], sizes = [2, 256], strides = [1, 1]} : vector<2x1024xf32> to vector<2x256xf32>
    %4 = arith.mulf %3, %3 : vector<2x256xf32>
    %5 = arith.addf %2, %4 : vector<2x256xf32>
    %6 = vector.extract_strided_slice %0 {offsets = [0, 512], sizes = [2, 256], strides = [1, 1]} : vector<2x1024xf32> to vector<2x256xf32>
    %7 = arith.mulf %6, %6 : vector<2x256xf32>
    %8 = arith.addf %5, %7 : vector<2x256xf32>
    %9 = vector.extract_strided_slice %0 {offsets = [0, 768], sizes = [2, 256], strides = [1, 1]} : vector<2x1024xf32> to vector<2x256xf32>
    %10 = arith.mulf %9, %9 : vector<2x256xf32>
    %11 = arith.addf %8, %10 : vector<2x256xf32>
    %cst = arith.constant 1.000000e-24 : f32
    %12 = vector.broadcast %cst : f32 to vector<2x256xf32>
    %13 = arith.maximumf %11, %12 : vector<2x256xf32>
    %14 = math.rsqrt %13 : vector<2x256xf32>
    %15 = vector.extract_strided_slice %0 {offsets = [0, 0], sizes = [2, 256], strides = [1, 1]} : vector<2x1024xf32> to vector<2x256xf32>
    %16 = arith.mulf %15, %14 : vector<2x256xf32>
    %c0_1 = arith.constant 0 : index
    %c0_2 = arith.constant 0 : index
    %17 = vector.load %arg2[%c0_1, %c0_2] : memref<2x1024xf32, #tpu.memory_space<vmem>>, vector<2x256xf32>
    tpu.vector_store %arg2[%c0_1, %c0_2], %16 {strides = array<i32>} : memref<2x1024xf32, #tpu.memory_space<vmem>>, vector<2x256xf32>,
    %18 = vector.extract_strided_slice %0 {offsets = [0, 256], sizes = [2, 256], strides = [1, 1]} : vector<2x1024xf32> to vector<2x256xf32>
    %19 = arith.mulf %18, %14 : vector<2x256xf32>
    %c0_3 = arith.constant 0 : index
    %c256 = arith.constant 256 : index
    %20 = vector.load %arg2[%c0_3, %c256] : memref<2x1024xf32, #tpu.memory_space<vmem>>, vector<2x256xf32>
    tpu.vector_store %arg2[%c0_3, %c256], %19 {strides = array<i32>} : memref<2x1024xf32, #tpu.memory_space<vmem>>, vector<2x256xf32>,
    %21 = vector.extract_strided_slice %0 {offsets = [0, 512], sizes = [2, 256], strides = [1, 1]} : vector<2x1024xf32> to vector<2x256xf32>
    %22 = arith.mulf %21, %14 : vector<2x256xf32>
    %c0_4 = arith.constant 0 : index
    %c512 = arith.constant 512 : index
    %23 = vector.load %arg2[%c0_4, %c512] : memref<2x1024xf32, #tpu.memory_space<vmem>>, vector<2x256xf32>
    tpu.vector_store %arg2[%c0_4, %c512], %22 {strides = array<i32>} : memref<2x1024xf32, #tpu.memory_space<vmem>>, vector<2x256xf32>,
    %24 = vector.extract_strided_slice %0 {offsets = [0, 768], sizes = [2, 256], strides = [1, 1]} : vector<2x1024xf32> to vector<2x256xf32>
    %25 = arith.mulf %24, %14 : vector<2x256xf32>
    %c0_5 = arith.constant 0 : index
    %c768 = arith.constant 768 : index
    %26 = vector.load %arg2[%c0_5, %c768] : memref<2x1024xf32, #tpu.memory_space<vmem>>, vector<2x256xf32>
    tpu.vector_store %arg2[%c0_5, %c768], %25 {strides = array<i32>} : memref<2x1024xf32, #tpu.memory_space<vmem>>, vector<2x256xf32>,
    return
  }
  func.func @transform_0(%arg0: i32) -> (i32, i32) {
    %c0_i32 = arith.constant 0 : i32
    %c0_i32_0 = arith.constant 0 : i32
    return %arg0, %c0_i32 : i32, i32
  }
  func.func @transform_1(%arg0: i32) -> (i32, i32) {
    %c0_i32 = arith.constant 0 : i32
    %c0_i32_0 = arith.constant 0 : i32
    return %arg0, %c0_i32 : i32, i32
  }
}

</mosaic_0001>

<bundles_post_ra>
// kernel: tpu_custom_call.1
= control target key start
LH: loop header
LB: loop body
LE: loop exit
PB: predicated region body
PF: predicated region fallthrough
CT: control target
= control target key end

     0   :  { %6 = vsyncpa [#allocation3], 0  ;;  %s148_s0 = inlined_call_operand.hbm [shape: f32[2,1024], index: 0, kind: input, shape index: {}]   ;;  %s149_s1 = inlined_call_operand.hbm [shape: f32[2,1024], index: 1, kind: output, shape index: {}]  }
   0x1   :  { %7 = vsyncpa [#allocation4], 0  ;;  %s13_s8 = sshll.u32 %s148_s0, 4  ;;  %s130_s9 = smov [#allocation2]   ;;  %s14_s8 = int_to_ptr.hbm [resolvable:$true] %s13_s8 }
   0x2   :  { %s15_s10 = sshll.u32 %s130_s9, 4  ;;  %s16_s10 = int_to_ptr.vmem [resolvable:$true] %s15_s10 }
   0x3   :  { %18 = dma.hbm_to_vmem [thread:$0]  %s14_s8, 256, %s16_s10, [#allocation3]  }
   0x4   :  { %126 = dma.done.wait [#allocation3], 256  }
   0x5   :  { %127 = vsyncadd [#allocation3], 4294967040  ;;  %v23_v0 = vld [vmem:[#allocation2] sm:$0xff]  ;;  %v24_v1 = vld [vmem:[#allocation2 + $0x8] sm:$0xff]  ;;  %s131_s0 = smov [#allocation5]   ;;  %s64_s14 = sshll.u32 %s149_s1, 4  ;;  %s65_s14 = int_to_ptr.hbm [resolvable:$true] %s64_s14 }
   0x6   :  { %v25_v2 = vmul.f32 %v23_v0, %v23_v0  ;;  %v27_v3 = vrot.slane %v23_v0, 4  ;;  %v34_v4 = vrot.slane %v24_v1, 4  ;;  %v31_v6 = vmul.f32 %v24_v1, %v24_v1  ;;  %s62_s11 = sshll.u32 %s131_s0, 4  ;;  %s63_s11 = int_to_ptr.vmem [resolvable:$true] %s62_s11 }
   0x8   :  { %v29_v5 = vmul.f32 %v27_v3, %v27_v3  ;;  %v36_v8 = vmul.f32 %v34_v4, %v34_v4 }
   0xa   :  { %v30_v7 = vadd.f32 %v29_v5, %v25_v2 }
   0xc   :  { %v32_v9 = vadd.f32 %v31_v6, %v30_v7 }
   0xe   :  { %v37_v10 = vadd.f32 %v36_v8, %v32_v9 }
  0x10   :  { %v38_v11 = vmax.f32 %v37_v10, 1e-24 }
  0x12   :  { %76 = vrsqrt.f32 %v38_v11  ;;  %vm45_vm0 = vweird.f32 %v38_v11 }
  0x18   :  { %v77_v12 = vpop.eup %76 }
  0x19   :  { %v40_v13 = vmul.f32 %v77_v12, %v38_v11  ;;  %vm46_vm1 = vweird.f32 %v77_v12 }
  0x1a   :  { %vm47_vm2 = vmor %vm45_vm0, %vm46_vm1 }
  0x1b   :  { %v41_v14 = vmul.f32 %v77_v12, %v40_v13 }
  0x1d   :  { %v42_v15 = vmul.f32 0.5, %v41_v14 }
  0x1f   :  { %v43_v16 = vsub.f32 1.5, %v42_v15 }
  0x21   :  { %v44_v17 = vmul.f32 %v77_v12, %v43_v16 }
  0x23   :  { %v48_v18 = vsel %vm47_vm2, %v77_v12, %v44_v17 }
  0x24   :  { %v49_v19 = vmul.f32 %v48_v18, %v23_v0  ;;  %v51_v20 = vmul.f32 %v48_v18, %v27_v3  ;;  %v53_v21 = vmul.f32 %v48_v18, %v24_v1  ;;  %v55_v22 = vmul.f32 %v48_v18, %v34_v4 }
  0x26   :  { %50 = vst [vmem:[#allocation5] sm:$0xf] %v49_v19 }
  0x27   :  { %52 = vst [vmem:[#allocation5 + $0x4] sm:$0xf] %v51_v20 }
  0x28   :  { %54 = vst [vmem:[#allocation5 + $0x8] sm:$0xf] %v53_v21 }
  0x29   :  { %56 = vst [vmem:[#allocation5 + $0xc] sm:$0xf] %v55_v22 }
  0x2a   :  { %67 = dma.vmem_to_hbm [thread:$0]  %s63_s11, 256, %s65_s14, [#allocation4]  }
  0x2b   :  { %128 = dma.done.wait [#allocation4], 256  }
  0x2c   :  { %129 = vsyncadd [#allocation4], 4294967040 }
  0x2d   :  { %72 = vsyncpa [#allocation3], 1 }
  0x2e   :  { %73 = vsyncpa [#allocation4], 1 }

</bundles_post_ra>
